<compile_context>
chip_gen: v6e
topology: v6e:2x2x1
jax: 0.10.0
libtpu: 0.0.40
codegen_flags: <defaults>
</compile_context>

<pallas_src>
import jax
import jax.numpy as jnp
from jax.experimental import pallas as pl
from jax.experimental.pallas import tpu as pltpu


# ----------------------------------------------------------------------------- kernels
def _pe_mask_kernel(x_ref, pos_ref, mask_ref, o_ref):
    # x/o: (Bt, TL, D); pos: (1, TL, D) broadcasts over batch; mask: (Bt, TL, 1)
    s = x_ref[...] + pos_ref[...]
    o_ref[...] = jnp.where(mask_ref[...] != 0, s, jnp.zeros_like(s))


def _pe_nomask_kernel(x_ref, pos_ref, o_ref):
    o_ref[...] = x_ref[...] + pos_ref[...]


# ----------------------------------------------------------------------------- pos table
def make_positional_table(max_len: int, d_model: int, dtype=jnp.float32) -> jnp.ndarray:
    """Deterministic positional-encoding table matching the PyTorch __init__.

    Build it once in the compute dtype so the per-call path does no cast pass.
    """
    positions = jnp.arange(max_len, dtype=jnp.float32).reshape(-1, 1)                  # (L, 1)
    div = jnp.power(10000.0, jnp.arange(0, d_model, 2, dtype=jnp.float32) / d_model)   # (ceil(D/2),)
    temp = positions / div                                                             # (L, ceil(D/2))
    pos = jnp.zeros((1, max_len, d_model), dtype=jnp.float32)
    pos = pos.at[:, :, 0::2].set(jnp.sin(temp)[None])
    pos = pos.at[:, :, 1::2].set(jnp.cos(temp)[None, :, : d_model // 2])
    return pos.astype(dtype)


# ----------------------------------------------------------------------------- tiling
_DEFAULT_STEP_BLOCK_BUDGET = 8 * 1024 * 1024   # one copy of all blocks; Pallas double-buffers
_VMEM_LIMIT_BYTES = 32 * 1024 * 1024           # raises v5e's 16 MiB default; < v7x 64 MiB physical


def _round_up(x: int, m: int) -> int:
    return ((x + m - 1) // m) * m


def _block_bytes(bt: int, tl: int, d: int, itemsize: int, masked: bool) -> int:
    b = (2 * bt * tl * d + tl * d) * itemsize          # x + out + pos blocks
    if masked:
        b += bt * tl * 128 * itemsize                  # (bt, tl, 1) block pads lanes to 128
    return b


def _choose_tiles(batch: int, seq: int, d: int, itemsize: int, masked: bool,
                  budget: int) -> tuple:
    """VMEM- and dtype-aware (batch_tile, seq_tile) selection."""
    sub = max(8, 32 // itemsize)                  # sublane multiple: 8 f32, 16 bf16, 32 int8/fp8
    tl = _round_up(seq, sub)
    bt = batch
    # Shrink the seq tile first (keeps the pos block shared across the whole batch).
    while tl > sub and _block_bytes(bt, tl, d, itemsize, masked) > budget:
        tl = max(sub, _round_up(tl // 2, sub))
    # If a single batch row at the minimum seq tile still does not fit, tile the batch.
    while bt > 1 and _block_bytes(bt, tl, d, itemsize, masked) > budget:
        bt = (bt + 1) // 2
    # A full-length seq block ("equal to the array dim") is always layout-legal
    # and avoids padding when the whole (padded) sequence fits in one tile.
    if tl >= seq:
        tl = seq
    # If everything landed in very few steps but each step is large, split so
    # input/output DMAs overlap and megacore sharding has work (keep >= ~1 MiB/step).
    while (pl.cdiv(seq, tl) * pl.cdiv(batch, bt) < 4
           and tl > sub
           and _block_bytes(bt, tl, d, itemsize, masked) > (2 << 20)):
        tl = max(sub, _round_up(tl // 2, sub))
    return bt, tl


# ----------------------------------------------------------------------------- wrapper
def positional_encoding(input_embedding: jnp.ndarray,
                        pos: jnp.ndarray,
                        padding_mask: jnp.ndarray = None,
                        *,
                        step_block_budget: int = _DEFAULT_STEP_BLOCK_BUDGET,
                        donate_input_embedding: bool = False) -> jnp.ndarray:
    """Pallas forward pass.

    input_embedding: (B, L, D)
    pos:             (1, max_len, D), max_len >= L (built by make_positional_table)
    padding_mask:    (B, L) or None; positions where mask == 0 are zeroed.
    """
    B, L, D = input_embedding.shape
    assert pos.ndim == 3 and pos.shape[0] == 1 and pos.shape[2] == D and pos.shape[1] >= L
    dtype = input_embedding.dtype
    max_len = pos.shape[1]
    masked = padding_mask is not None

    # Fallback cast only (the fast path builds the table in the compute dtype).
    if pos.dtype != dtype:
        pos = pos.astype(dtype)

    x = input_embedding
    out_reshape = None

    # Lane-dense repack for small d_model (no-mask path): fold k = 128 // D
    # consecutive positions per row so stores/loads are full 128-lane vectors.
    if (not masked) and D < 128 and 128 % D == 0 and L % (128 // D) == 0:
        k = 128 // D
        x = x.reshape(B, L // k, k * D)                       # free reshape (row-major)
        if max_len % k == 0:
            pos = pos.reshape(1, max_len // k, k * D)
        else:
            pos = pos[:, :L, :].reshape(1, L // k, k * D)
        out_reshape = (B, L, D)
        B_, L_, D_ = B, L // k, k * D
    else:
        B_, L_, D_ = B, L, D
    # TODO(synk): lane-dense repack for the masked path when D < 128 (needs an
    # in-kernel lane expansion of the packed mask); it falls back to masked stores.

    itemsize = jnp.dtype(dtype).itemsize
    bt, tl = _choose_tiles(B_, L_, D_, itemsize, masked, step_block_budget)
    grid = (pl.cdiv(L_, tl), pl.cdiv(B_, bt))   # seq tiles outermost -> pos block reused across batch tiles

    x_spec = pl.BlockSpec((bt, tl, D_), lambda l, b: (b, l, 0))
    pos_spec = pl.BlockSpec((1, tl, D_), lambda l, b: (0, l, 0))   # depends only on the seq tile
    out_spec = pl.BlockSpec((bt, tl, D_), lambda l, b: (b, l, 0))

    compiler_params = pltpu.CompilerParams(
        dimension_semantics=("parallel", "parallel"),
        vmem_limit_bytes=_VMEM_LIMIT_BYTES)
    out_shape = jax.ShapeDtypeStruct((B_, L_, D_), dtype)
    io_aliases = {0: 0} if donate_input_embedding else {}

    if not masked:
        cost = pl.CostEstimate(
            flops=B_ * L_ * D_, transcendentals=0,
            bytes_accessed=(2 * B_ * L_ * D_ + L_ * D_) * itemsize)
        out = pl.pallas_call(
            _pe_nomask_kernel,
            out_shape=out_shape,
            grid_spec=pltpu.PrefetchScalarGridSpec(
                num_scalar_prefetch=0, grid=grid,
                in_specs=[x_spec, pos_spec], out_specs=out_spec),
            compiler_params=compiler_params,
            cost_estimate=cost,
            input_output_aliases=io_aliases,
        )(x, pos)
    else:
        # 0/1 mask in the compute dtype; the kernel does a select (exact zeros even
        # if x holds Inf/NaN at padded positions, matching masked_fill).
        mask3 = (padding_mask != 0).astype(dtype).reshape(B, L, 1)
        mask_spec = pl.BlockSpec((bt, tl, 1), lambda l, b: (b, l, 0))
        cost = pl.CostEstimate(
            flops=2 * B_ * L_ * D_, transcendentals=0,
            bytes_accessed=(2 * B_ * L_ * D_ + L_ * D_ + B * L) * itemsize)
        out = pl.pallas_call(
            _pe_mask_kernel,
            out_shape=out_shape,
            grid_spec=pltpu.PrefetchScalarGridSpec(
                num_scalar_prefetch=0, grid=grid,
                in_specs=[x_spec, pos_spec, mask_spec], out_specs=out_spec),
            compiler_params=compiler_params,
            cost_estimate=cost,
            input_output_aliases=io_aliases,
        )(x, pos, mask3)

    if out_reshape is not None:
        out = out.reshape(out_reshape)
    return out


# ----------------------------------------------------------------------------- test
if __name__ == "__main__":
    key = jax.random.PRNGKey(0)
    k_emb, k_mask, k_emb2, k_mask2 = jax.random.split(key, 4)

    # --- toy shape implied by the module: batch=2, seq=8, d_model=32 ---------
    B, L, D = 2, 8, 32
    x = jax.random.normal(k_emb, (B, L, D), dtype=jnp.float32)
    padding_mask = (jax.random.uniform(k_mask, (B, L)) > 0.25).astype(jnp.int32)
    pos = make_positional_table(L, D, jnp.float32)

    out = jax.block_until_ready(positional_encoding(x, pos, padding_mask))
    ref = jnp.where((padding_mask == 0)[:, :, None], 0.0, x + pos)
    assert jnp.allclose(out, ref, atol=1e-6), "mismatch (masked, f32)"

    out_nm = jax.block_until_ready(positional_encoding(x, pos, None))
    assert jnp.allclose(out_nm, x + pos, atol=1e-6), "mismatch (no-mask, f32, lane-packed)"

    # --- bf16, lane-dense d_model, max_len > L, forced multi-tile + ragged last tile
    B2, L2, D2, MAXLEN2 = 2, 1000, 128, 1024
    x2 = jax.random.normal(k_emb2, (B2, L2, D2), dtype=jnp.bfloat16)
    mask2 = (jax.random.uniform(k_mask2, (B2, L2)) > 0.1).astype(jnp.int32)
    pos2 = make_positional_table(MAXLEN2, D2, jnp.bfloat16)

    out2 = jax.block_until_ready(
        positional_encoding(x2, pos2, mask2, step_block_budget=256 * 1024))
    ref2 = x2.astype(jnp.float32) + pos2[:, :L2].astype(jnp.float32)
    ref2 = jnp.where((mask2 == 0)[:, :, None], 0.0, ref2)
    assert jnp.allclose(out2.astype(jnp.float32), ref2, atol=2e-2, rtol=2e-2), \
        "mismatch (masked, bf16, tiled/ragged)"

    out2_nm = jax.block_until_ready(
        positional_encoding(x2, pos2, None, step_block_budget=256 * 1024))
    ref2_nm = x2.astype(jnp.float32) + pos2[:, :L2].astype(jnp.float32)
    assert jnp.allclose(out2_nm.astype(jnp.float32), ref2_nm, atol=2e-2, rtol=2e-2), \
        "mismatch (no-mask, bf16, tiled/ragged)"

    print("KERNEL_OK")
</pallas_src>

<mosaic_0001>
module attributes {stable_mosaic.version = 11 : i64} {
  func.func @_pe_mask_kernel(%arg0: i32, %arg1: i32, %arg2: memref<2x8x32xf32, #tpu.memory_space<vmem>>, %arg3: memref<1x8x32xf32, #tpu.memory_space<vmem>>, %arg4: memref<2x8x1xf32, #tpu.memory_space<vmem>>, %arg5: memref<2x8x32xf32, #tpu.memory_space<vmem>>) attributes {dimension_semantics = [#tpu.dimension_semantics<parallel>, #tpu.dimension_semantics<parallel>], iteration_bounds = array<i64: 1, 1>, scalar_prefetch = 0 : i64, scratch_operands = 0 : i64, tpu.core_type = #tpu.core_type<tc>, window_params = [{transform_indices = @transform_0, window_bounds = array<i64: 2, 8, 32>}, {transform_indices = @transform_1, window_bounds = array<i64: 1, 8, 32>}, {transform_indices = @transform_2, window_bounds = array<i64: 2, 8, 1>}, {transform_indices = @transform_3, window_bounds = array<i64: 2, 8, 32>}]} {
    %c0 = arith.constant 0 : index
    %c0_0 = arith.constant 0 : index
    %c0_1 = arith.constant 0 : index
    %0 = vector.load %arg2[%c0, %c0_0, %c0_1] : memref<2x8x32xf32, #tpu.memory_space<vmem>>, vector<2x8x32xf32>
    %c0_2 = arith.constant 0 : index
    %c0_3 = arith.constant 0 : index
    %c0_4 = arith.constant 0 : index
    %1 = vector.load %arg3[%c0_2, %c0_3, %c0_4] : memref<1x8x32xf32, #tpu.memory_space<vmem>>, vector<1x8x32xf32>
    %2 = vector.broadcast %1 : vector<1x8x32xf32> to vector<2x8x32xf32>
    %3 = arith.addf %0, %2 : vector<2x8x32xf32>
    %c0_5 = arith.constant 0 : index
    %c0_6 = arith.constant 0 : index
    %c0_7 = arith.constant 0 : index
    %4 = vector.load %arg4[%c0_5, %c0_6, %c0_7] : memref<2x8x1xf32, #tpu.memory_space<vmem>>, vector<2x8x1xf32>
    %cst = arith.constant 0.000000e+00 : f32
    %5 = vector.broadcast %cst : f32 to vector<2x8x1xf32>
    %6 = arith.cmpf one, %4, %5 : vector<2x8x1xf32>
    %cst_8 = arith.constant 0.000000e+00 : f32
    %7 = vector.broadcast %cst_8 : f32 to vector<2x8x32xf32>
    %8 = vector.shape_cast %6 : vector<2x8x1xi1> to vector<2x8x1xi1>
    %9 = vector.broadcast %8 : vector<2x8x1xi1> to vector<2x8x32xi1>
    %10 = arith.select %9, %3, %7 : vector<2x8x32xi1>, vector<2x8x32xf32>
    %c0_9 = arith.constant 0 : index
    %c0_10 = arith.constant 0 : index
    %c0_11 = arith.constant 0 : index
    %11 = vector.load %arg5[%c0_9, %c0_10, %c0_11] : memref<2x8x32xf32, #tpu.memory_space<vmem>>, vector<2x8x32xf32>
    tpu.vector_store %arg5[%c0_9, %c0_10, %c0_11], %10 {strides = array<i32>} : memref<2x8x32xf32, #tpu.memory_space<vmem>>, vector<2x8x32xf32>,
    return
  }
  func.func @transform_0(%arg0: i32, %arg1: i32) -> (i32, i32, i32) {
    %c0_i32 = arith.constant 0 : i32
    %c0_i32_0 = arith.constant 0 : i32
    return %arg1, %arg0, %c0_i32 : i32, i32, i32
  }
  func.func @transform_1(%arg0: i32, %arg1: i32) -> (i32, i32, i32) {
    %c0_i32 = arith.constant 0 : i32
    %c0_i32_0 = arith.constant 0 : i32
    %c0_i32_1 = arith.constant 0 : i32
    return %c0_i32, %arg0, %c0_i32_0 : i32, i32, i32
  }
  func.func @transform_2(%arg0: i32, %arg1: i32) -> (i32, i32, i32) {
    %c0_i32 = arith.constant 0 : i32
    %c0_i32_0 = arith.constant 0 : i32
    return %arg1, %arg0, %c0_i32 : i32, i32, i32
  }
  func.func @transform_3(%arg0: i32, %arg1: i32) -> (i32, i32, i32) {
    %c0_i32 = arith.constant 0 : i32
    %c0_i32_0 = arith.constant 0 : i32
    return %arg1, %arg0, %c0_i32 : i32, i32, i32
  }
}

</mosaic_0001>

<bundles_post_ra>
// kernel: tpu_custom_call.1
= control target key start
LH: loop header
LB: loop body
LE: loop exit
PB: predicated region body
PF: predicated region fallthrough
CT: control target
= control target key end

     0   :  { %8 = vsyncpa [#allocation3], 0  ;;  %s161_s0 = inlined_call_operand.vmem [shape: f32[2,8,32], index: 0, kind: input, shape index: {}]   ;;  %s162_s1 = inlined_call_operand.hbm [shape: f32[1,8,32], index: 1, kind: input, shape index: {}]   ;;  %s163_s2 = inlined_call_operand.vmem [shape: f32[2,8,1], index: 2, kind: input, shape index: {}]   ;;  %s164_s3 = inlined_call_operand.hbm [shape: f32[2,8,32], index: 3, kind: output, shape index: {}]  }
   0x1   :  { %9 = vsyncpa [#allocation4], 0  ;;  %s118_s12 = smov [#allocation2]  }
   0x2   :  { %s18_s13 = sshll.u32 %s118_s12, 4  ;;  %s19_s13 = int_to_ptr.vmem [resolvable:$true] %s18_s13 }
   0x3   :  { %s82_s14 = scalar_lea.vmem %s19_s13, 128  ;;  %p87_p1 = scmp.lt.s32.totalorder %s19_s13, %s19_s13 }
   0x4   :  { %p83_p0 = scmp.ne.s32.totalorder %s19_s13, %s82_s14  ;;  %p88_p2 = scmp.lt.s32.totalorder %s82_s14, %s82_s14 }
   0x6   :  { %p89_p3 = por %p88_p2, %p87_p1 }
   0x8   :  { %p90_p4 = pnand %p89_p3, %p83_p0 }
   0xa   :  { %93 = shalt.err (!%p90_p4)
}
   0xb   :  { %21 = dma.hbm_to_vmem [thread:$0]  %s162_s1, 128, %s19_s13, [#allocation3]  }
   0xc   :  { %114 = dma.done.wait [#allocation3], 128  }
   0xd   :  { %115 = vsyncadd [#allocation3], 4294967168  ;;  %v119_v0 = vmov 0   ;;  %v32_v1 = vld [vmem:[%s163_s2] sm:$0xff]  ;;  %v33_v2 = vld [vmem:[%s163_s2 + $0x8] sm:$0xff]  ;;  %vm48_vm2 = vcmask 261120  }
   0xe   :  { %73 = vset.pattern.permute.xlu0 %v119_v0  ;;  %vm34_vm0 = vcmp.ne.f32.partialorder %v32_v1, 0.0  ;;  %vm35_vm1 = vcmp.ne.f32.partialorder %v33_v2, 0.0  ;;  %v27_v5 = vld [vmem:[%s161_s0] sm:$0xff]  ;;  %v28_v8 = vld [vmem:[%s161_s0 + $0x8] sm:$0xff]  ;;  %s120_s2 = smov [#allocation5]  }
   0xf   :  { %v36_v3 = vsel %vm34_vm0, 1, %v119_v0  ;;  %v37_v4 = vsel %vm35_vm1, 1, %v119_v0  ;;  %v29_v6 = vld [vmem:[#allocation2] sm:$0xff]  ;;  %s56_s24 = sshll.u32 %s120_s2, 4  ;;  %s57_s24 = int_to_ptr.vmem [resolvable:$true] %s56_s24 }
  0x10   :  { %39 = vperm.xlu0 %73, %v36_v3   ;;  %v30_v7 = vadd.f32 %v29_v6, %v27_v5  ;;  %v31_v11 = vadd.f32 %v29_v6, %v28_v8  ;;  %s94_s25 = scalar_lea.vmem %s57_s24, 256  ;;  %p99_p6 = scmp.lt.s32.totalorder %s57_s24, %s57_s24 }
  0x11   :  { %p95_p5 = scmp.ne.s32.totalorder %s57_s24, %s94_s25  ;;  %p100_p7 = scmp.lt.s32.totalorder %s94_s25, %s94_s25 }
  0x13   :  { %p101_p8 = por %p100_p7, %p99_p6 }
  0x14   :  { %42 = vperm.xlu0 %73, %v37_v4  }
  0x15   :  { %p102_p9 = pnand %p101_p8, %p95_p5 }
  0x8b   :  { %v40_v9 = vpop.permute.xlu0 %39 }
  0x8c   :  { %vm44_vm3 = vcmp.eq.s32.totalorder %v40_v9, 1 }
  0x8d   :  { %v46_v10 = vsel %vm44_vm3, %v30_v7, 0.0 }
  0x8e   :  { %49 = vst.msk [vmem:[#allocation5] sm:$0xff] %vm48_vm2, %v46_v10 }
  0x8f   :  { %v43_v12 = vpop.permute.xlu0 %42 }
  0x90   :  { %vm45_vm4 = vcmp.eq.s32.totalorder %v43_v12, 1 }
  0x91   :  { %v47_v13 = vsel %vm45_vm4, %v31_v11, 0.0 }
  0x92   :  { %50 = vst.msk [vmem:[#allocation5 + $0x8] sm:$0xff] %vm48_vm2, %v47_v13 }
  0x93   :  { %105 = shalt.err (!%p102_p9)
}
  0x94   :  { %s121_s0 = smov 128   ;;  %s122_s26 = smov 8  }
  0x95   :  { %62 = dma.vmem_to_hbm [thread:$0]  %s57_s24, 256, %s164_s3, [#allocation4], %s121_s0, %s121_s0, %s122_s26  }
  0x96   :  { %116 = dma.done.wait [#allocation4], 256  }
  0x97   :  { %117 = vsyncadd [#allocation4], 4294967040 }
  0x98   :  { %66 = vsyncpa [#allocation3], 1 }
  0x99   :  { %67 = vsyncpa [#allocation4], 1 }

</bundles_post_ra>
